<compile_context>
chip_gen: v5e
topology: v5e:2x2
jax: 0.10.0
libtpu: 0.0.40
codegen_flags: <defaults>
</compile_context>

<pallas_src>
import functools

import jax
import jax.numpy as jnp
from jax.experimental import pallas as pl
from jax.experimental.pallas import tpu as pltpu


def _group_kernel(xyz_ref, xyz_smem_ref, out_ref, dmat_ref, *, G, M):
    # xyz_ref      : (1, 3, N)    VMEM, points, lane-dense along N
    # xyz_smem_ref : (B*3*N,)     SMEM, same data flattened for scalar reads
    # out_ref      : (1, M, 3, G) slab k = k-th nearest neighbour of every
    #                             group (raw coords); slab 0 == FPS centres
    # dmat_ref     : (G, N)       VMEM scratch, squared dist centre_g -> point
    N = xyz_ref.shape[2]
    b = pl.program_id(0)
    base = b * (3 * N)

    xyz = xyz_ref[0]                                               # (3, N)
    xr = xyz[0:1, :]                                               # (1, N)
    yr = xyz[1:2, :]
    zr = xyz[2:3, :]

    iota_n = jax.lax.broadcasted_iota(jnp.int32, (1, N), 1)        # (1, N)

    # ----- Farthest point sampling (G fully serial steps) --------------------
    # TODO(synk): pointops.fps starts from a random point; we start at index 0.
    def fps_body(g, carry):
        dist, far = carry                                          # (1,N), ()
        # Centroid coordinates via 3 scalar SMEM loads (off the vector path).
        cx = xyz_smem_ref[base + far]
        cy = xyz_smem_ref[base + N + far]
        cz = xyz_smem_ref[base + 2 * N + far]
        d = (xr - cx) ** 2 + (yr - cy) ** 2 + (zr - cz) ** 2       # (1, N)
        dmat_ref[pl.ds(g, 1), :] = d                               # reused by KNN
        dist = jnp.minimum(dist, d)
        maxv = jnp.max(dist)
        far = jnp.min(jnp.where(dist == maxv, iota_n, jnp.int32(N)))
        return dist, far

    jax.lax.fori_loop(
        0, G, fps_body,
        (jnp.full((1, N), jnp.inf, jnp.float32), jnp.int32(0)))

    # ----- KNN + fused one-hot gather (ascending distance) -------------------
    iota_gn = jax.lax.broadcasted_iota(jnp.int32, (G, N), 1)       # (G, N)

    def knn_body(k, carry):
        dmat = dmat_ref[...]                                       # (G, N)
        minv = jnp.min(dmat, axis=-1, keepdims=True)               # (G, 1)
        idx = jnp.min(jnp.where(dmat == minv, iota_gn, jnp.int32(N)),
                      axis=-1, keepdims=True)                      # (G, 1) first min
        mask = iota_gn == idx                                      # single compare
        onehot = mask.astype(jnp.float32)                          # 0/1 exact
        # Gather this step's neighbour of every group on the MXU: (3,N)@(G,N)^T
        gathered = jax.lax.dot_general(
            xyz, onehot, (((1,), (1,)), ((), ())),
            preferred_element_type=jnp.float32)                    # (3, G)
        out_ref[0, pl.ds(k, 1), :, :] = gathered.reshape(1, 3, G)
        dmat_ref[...] = jnp.where(mask, jnp.inf, dmat)             # knock out
        return carry

    jax.lax.fori_loop(0, M, knn_body, jnp.int32(0))


def _round_up(x, m):
    return (x + m - 1) // m * m


@functools.partial(jax.jit, static_argnames=("num_group", "group_size"))
def group(xyz, num_group, group_size):
    """xyz: (B, N, 3) float32 -> (neighborhood (B,G,M,3), center (B,G,3))."""
    B, N, C = xyz.shape
    assert C == 3
    G, M = num_group, group_size

    xyz_t = jnp.transpose(xyz, (0, 2, 1))                          # (B, 3, N)
    # SMEM copy for scalar centroid reads; 1-D to dodge 2-D SMEM padding.
    # (Scales as B*3*N floats; for very large clouds switch to a per-batch DMA.)
    xyz_flat = xyz_t.reshape(B * 3 * N)

    # Explicit VMEM budget (padded tiles, double-buffered in/out, dmat scratch).
    n_pad = _round_up(N, 128)
    g_pad = _round_up(G, 128)
    in_tile = 8 * n_pad * 4                                        # (1,3,N) tile
    out_tile = M * 8 * g_pad * 4                                   # (1,M,3,G) tile
    dmat_bytes = _round_up(G, 8) * n_pad * 4
    est = 2 * in_tile + 2 * out_tile + dmat_bytes
    vmem_limit = int(min(64 * 1024 * 1024,
                         max(2 * est + (2 << 20), 16 * 1024 * 1024)))

    cost = pl.CostEstimate(
        flops=int(B * (2 * 3 * N * G * M + 8 * G * N + 6 * M * G * N)),
        transcendentals=0,
        bytes_accessed=int(xyz.size * 4 * 2 + B * M * 3 * G * 4))

    kernel = functools.partial(_group_kernel, G=G, M=M)
    out = pl.pallas_call(
        kernel,
        out_shape=jax.ShapeDtypeStruct((B, M, 3, G), jnp.float32),
        grid=(B,),
        in_specs=[
            pl.BlockSpec((1, 3, N), lambda b: (b, 0, 0)),
            pl.BlockSpec(memory_space=pltpu.MemorySpace.SMEM),
        ],
        out_specs=pl.BlockSpec((1, M, 3, G), lambda b: (b, 0, 0, 0)),
        scratch_shapes=[
            pltpu.VMEM((G, N), jnp.float32),                       # centre->point dists
        ],
        compiler_params=pltpu.CompilerParams(
            dimension_semantics=("parallel",),                     # megacore over batch
            vmem_limit_bytes=vmem_limit),
        cost_estimate=cost,
    )(xyz_t, xyz_flat)

    # Slab 0 is each group's nearest neighbour of its own centre, which is the
    # centre itself (squared distance exactly 0), so centres come for free.
    center = jnp.transpose(out[:, 0], (0, 2, 1))                   # (B, G, 3)
    gathered = jnp.transpose(out, (0, 3, 1, 2))                    # (B, G, M, 3)
    neighborhood = gathered - center[:, :, None, :]
    return neighborhood, center


def _group_reference(xyz, G, M):
    """Pure-JAX reference with the same deterministic FPS start / tie-breaks."""
    B, N, _ = xyz.shape

    def fps_one(pts):
        def body(carry, _):
            dist, far = carry
            centroid = pts[far]
            d = jnp.sum((pts - centroid) ** 2, axis=-1)
            dist = jnp.minimum(dist, d)
            return (dist, jnp.argmax(dist).astype(jnp.int32)), centroid
        init = (jnp.full((N,), jnp.inf, jnp.float32), jnp.int32(0))
        _, centers = jax.lax.scan(body, init, None, length=G)
        return centers                                             # (G, 3)

    center = jax.vmap(fps_one)(xyz)                                # (B, G, 3)
    d = jnp.sum((center[:, :, None, :] - xyz[:, None, :, :]) ** 2, axis=-1)
    idx = jnp.argsort(d, axis=-1)[:, :, :M]                        # stable -> same order
    gathered = jax.vmap(lambda p, i: p[i])(xyz, idx)               # (B, G, M, 3)
    return gathered - center[:, :, None, :], center


if __name__ == "__main__":
    B, N, G, M = 2, 64, 8, 8
    key = jax.random.PRNGKey(0)
    xyz = jax.random.normal(key, (B, N, 3), dtype=jnp.float32)

    neighborhood, center = group(xyz, num_group=G, group_size=M)
    jax.block_until_ready((neighborhood, center))

    assert neighborhood.shape == (B, G, M, 3)
    assert center.shape == (B, G, 3)
    # Each center is itself a cloud point, so its nearest neighbor is itself:
    # the first neighbor offset must be (exactly) zero.
    assert float(jnp.max(jnp.abs(neighborhood[:, :, 0, :]))) < 1e-5
    assert bool(jnp.all(jnp.isfinite(neighborhood))) and bool(jnp.all(jnp.isfinite(center)))

    n_ref, c_ref = _group_reference(xyz, G, M)
    assert bool(jnp.allclose(center, c_ref, rtol=1e-4, atol=1e-4))
    assert bool(jnp.allclose(neighborhood, n_ref, rtol=1e-4, atol=1e-4))

    print("KERNEL_OK")
</pallas_src>

<mosaic_0001>
module attributes {stable_mosaic.version = 11 : i64} {
  func.func @_group_kernel(%arg0: i32, %arg1: memref<1x3x64xf32, #tpu.memory_space<vmem>>, %arg2: memref<384xf32, #tpu.memory_space<smem>>, %arg3: memref<1x8x3x8xf32, #tpu.memory_space<vmem>>, %arg4: memref<8x64xf32, #tpu.memory_space<vmem>>) attributes {dimension_semantics = [#tpu.dimension_semantics<parallel>], iteration_bounds = array<i64: 2>, scalar_prefetch = 0 : i64, scratch_operands = 1 : i64, tpu.core_type = #tpu.core_type<tc>, window_params = [{transform_indices = @transform_0, window_bounds = array<i64: 1, 3, 64>}, {transform_indices = @transform_1, window_bounds = array<i64: 384>}, {transform_indices = @transform_2, window_bounds = array<i64: 1, 8, 3, 8>}]} {
    %c192_i32 = arith.constant 192 : i32
    %0 = arith.muli %arg0, %c192_i32 : i32
    %c0 = arith.constant 0 : index
    %c0_0 = arith.constant 0 : index
    %c0_1 = arith.constant 0 : index
    %1 = vector.load %arg1[%c0, %c0_0, %c0_1] : memref<1x3x64xf32, #tpu.memory_space<vmem>>, vector<1x3x64xf32>
    %2 = vector.shape_cast %1 : vector<1x3x64xf32> to vector<3x64xf32>
    %3 = vector.extract_strided_slice %2 {offsets = [0, 0], sizes = [1, 64], strides = [1, 1]} : vector<3x64xf32> to vector<1x64xf32>
    %4 = vector.extract_strided_slice %2 {offsets = [1, 0], sizes = [1, 64], strides = [1, 1]} : vector<3x64xf32> to vector<1x64xf32>
    %5 = vector.extract_strided_slice %2 {offsets = [2, 0], sizes = [1, 64], strides = [1, 1]} : vector<3x64xf32> to vector<1x64xf32>
    %6 = tpu.iota {dimensions = array<i32: 1>} : vector<1x64xi32>
    %cst = arith.constant 0x7F800000 : f32
    %7 = vector.broadcast %cst : f32 to vector<1x64xf32>
    %c0_i32 = arith.constant 0 : i32
    %c0_i32_2 = arith.constant 0 : i32
    %c8_i32 = arith.constant 8 : i32
    %8 = arith.addi %c0_i32_2, %c8_i32 : i32
    %c1_i32 = arith.constant 1 : i32
    %9:2 = scf.for %arg5 = %c0_i32_2 to %8 step %c1_i32 iter_args(%arg6 = %7, %arg7 = %c0_i32) -> (vector<1x64xf32>, i32)  : i32 {
      %12 = arith.addi %0, %arg7 : i32
      %13 = arith.index_cast %12 : i32 to index
      %14 = memref.load %arg2[%13] : memref<384xf32, #tpu.memory_space<smem>>
      %c64_i32 = arith.constant 64 : i32
      %15 = arith.addi %0, %c64_i32 : i32
      %16 = arith.addi %15, %arg7 : i32
      %17 = arith.index_cast %16 : i32 to index
      %18 = memref.load %arg2[%17] : memref<384xf32, #tpu.memory_space<smem>>
      %c128_i32 = arith.constant 128 : i32
      %19 = arith.addi %0, %c128_i32 : i32
      %20 = arith.addi %19, %arg7 : i32
      %21 = arith.index_cast %20 : i32 to index
      %22 = memref.load %arg2[%21] : memref<384xf32, #tpu.memory_space<smem>>
      %23 = vector.broadcast %14 : f32 to vector<1x64xf32>
      %24 = arith.subf %3, %23 : vector<1x64xf32>
      %25 = arith.mulf %24, %24 : vector<1x64xf32>
      %26 = vector.broadcast %18 : f32 to vector<1x64xf32>
      %27 = arith.subf %4, %26 : vector<1x64xf32>
      %28 = arith.mulf %27, %27 : vector<1x64xf32>
      %29 = arith.addf %25, %28 : vector<1x64xf32>
      %30 = vector.broadcast %22 : f32 to vector<1x64xf32>
      %31 = arith.subf %5, %30 : vector<1x64xf32>
      %32 = arith.mulf %31, %31 : vector<1x64xf32>
      %33 = arith.addf %29, %32 : vector<1x64xf32>
      %34 = arith.index_cast %arg5 : i32 to index
      %c0_8 = arith.constant 0 : index
      %35 = vector.load %arg4[%34, %c0_8] : memref<8x64xf32, #tpu.memory_space<vmem>>, vector<1x64xf32>
      tpu.vector_store %arg4[%34, %c0_8], %33 {strides = array<i32>} : memref<8x64xf32, #tpu.memory_space<vmem>>, vector<1x64xf32>,
      %36 = arith.minimumf %arg6, %33 : vector<1x64xf32>
      %37 = vector.shape_cast %36 : vector<1x64xf32> to vector<1x1x64xf32>
      %cst_9 = arith.constant dense<0xFF800000> : vector<1xf32>
      %38 = vector.multi_reduction <maximumf>, %37, %cst_9 [1, 2] : vector<1x1x64xf32> to vector<1xf32>
      %39 = vector.shape_cast %38 : vector<1xf32> to vector<1x1x1xf32>
      %40 = vector.extract %39[0, 0, 0] : f32 from vector<1x1x1xf32>
      %41 = vector.broadcast %40 : f32 to vector<1x64xf32>
      %42 = arith.cmpf oeq, %36, %41 : vector<1x64xf32>
      %c64_i32_10 = arith.constant 64 : i32
      %43 = vector.broadcast %c64_i32_10 : i32 to vector<1x64xi32>
      %44 = arith.select %42, %6, %43 : vector<1x64xi1>, vector<1x64xi32>
      %45 = vector.shape_cast %44 : vector<1x64xi32> to vector<1x1x64xi32>
      %cst_11 = arith.constant dense<2147483647> : vector<1xi32>
      %46 = vector.multi_reduction <minsi>, %45, %cst_11 [1, 2] : vector<1x1x64xi32> to vector<1xi32>
      %47 = vector.shape_cast %46 : vector<1xi32> to vector<1x1x1xi32>
      %48 = vector.extract %47[0, 0, 0] : i32 from vector<1x1x1xi32>
      scf.yield %36, %48 : vector<1x64xf32>, i32
    }
    %c8_i32_3 = arith.constant 8 : i32
    %10 = tpu.iota {dimensions = array<i32: 1>} : vector<8x64xi32>
    %c0_i32_4 = arith.constant 0 : i32
    %c8_i32_5 = arith.constant 8 : i32
    %11 = arith.addi %c0_i32_4, %c8_i32_5 : i32
    %c1_i32_6 = arith.constant 1 : i32
    scf.for %arg5 = %c0_i32_4 to %11 step %c1_i32_6  : i32 {
      %c0_8 = arith.constant 0 : index
      %c0_9 = arith.constant 0 : index
      %12 = vector.load %arg4[%c0_8, %c0_9] : memref<8x64xf32, #tpu.memory_space<vmem>>, vector<8x64xf32>
      %cst_10 = arith.constant dense<0x7F800000> : vector<8xf32>
      %13 = vector.multi_reduction <minimumf>, %12, %cst_10 [1] : vector<8x64xf32> to vector<8xf32>
      %14 = vector.shape_cast %13 : vector<8xf32> to vector<8x1xf32>
      %15 = vector.broadcast %14 : vector<8x1xf32> to vector<8x64xf32>
      %16 = arith.cmpf oeq, %12, %15 : vector<8x64xf32>
      %c64_i32 = arith.constant 64 : i32
      %17 = vector.broadcast %c64_i32 : i32 to vector<8x64xi32>
      %18 = arith.select %16, %10, %17 : vector<8x64xi1>, vector<8x64xi32>
      %cst_11 = arith.constant dense<2147483647> : vector<8xi32>
      %19 = vector.multi_reduction <minsi>, %18, %cst_11 [1] : vector<8x64xi32> to vector<8xi32>
      %20 = vector.shape_cast %19 : vector<8xi32> to vector<8x1xi32>
      %21 = vector.broadcast %20 : vector<8x1xi32> to vector<8x64xi32>
      %22 = arith.cmpi eq, %10, %21 : vector<8x64xi32>
      %23 = arith.extui %22 : vector<8x64xi1> to vector<8x64xi32>
      %24 = arith.sitofp %23 : vector<8x64xi32> to vector<8x64xf32>
      %cst_12 = arith.constant dense<0.000000e+00> : vector<3x8xf32>
      %25 = tpu.matmul %2, %24, %cst_12 {dimension_numbers = #tpu.dot_dimension_numbers<[1], [1], [0], [0], [0, 0, 1, 0], [], []>} : vector<3x64xf32>, vector<8x64xf32>, vector<3x8xf32> -> vector<3x8xf32>
      %26 = vector.shape_cast %25 : vector<3x8xf32> to vector<1x3x8xf32>
      %c0_13 = arith.constant 0 : index
      %27 = arith.index_cast %arg5 : i32 to index
      %c0_14 = arith.constant 0 : index
      %c0_15 = arith.constant 0 : index
      %28 = vector.load %arg3[%c0_13, %27, %c0_14, %c0_15] : memref<1x8x3x8xf32, #tpu.memory_space<vmem>>, vector<1x1x3x8xf32>
      %29 = vector.shape_cast %28 : vector<1x1x3x8xf32> to vector<1x3x8xf32>
      %30 = vector.shape_cast %26 : vector<1x3x8xf32> to vector<1x1x3x8xf32>
      tpu.vector_store %arg3[%c0_13, %27, %c0_14, %c0_15], %30 {strides = array<i32>} : memref<1x8x3x8xf32, #tpu.memory_space<vmem>>, vector<1x1x3x8xf32>,
      %cst_16 = arith.constant 0x7F800000 : f32
      %31 = vector.broadcast %cst_16 : f32 to vector<8x64xf32>
      %32 = arith.select %22, %31, %12 : vector<8x64xi1>, vector<8x64xf32>
      %c0_17 = arith.constant 0 : index
      %c0_18 = arith.constant 0 : index
      %33 = vector.load %arg4[%c0_17, %c0_18] : memref<8x64xf32, #tpu.memory_space<vmem>>, vector<8x64xf32>
      tpu.vector_store %arg4[%c0_17, %c0_18], %32 {strides = array<i32>} : memref<8x64xf32, #tpu.memory_space<vmem>>, vector<8x64xf32>,
    }
    %c8_i32_7 = arith.constant 8 : i32
    return
  }
  func.func @transform_0(%arg0: i32) -> (i32, i32, i32) {
    %c0_i32 = arith.constant 0 : i32
    %c0_i32_0 = arith.constant 0 : i32
    %c0_i32_1 = arith.constant 0 : i32
    return %arg0, %c0_i32, %c0_i32_0 : i32, i32, i32
  }
  func.func @transform_1(%arg0: i32) -> i32 {
    %c0_i32 = arith.constant 0 : i32
    %c0_i32_0 = arith.constant 0 : i32
    return %c0_i32 : i32
  }
  func.func @transform_2(%arg0: i32) -> (i32, i32, i32, i32) {
    %c0_i32 = arith.constant 0 : i32
    %c0_i32_0 = arith.constant 0 : i32
    %c0_i32_1 = arith.constant 0 : i32
    %c0_i32_2 = arith.constant 0 : i32
    return %arg0, %c0_i32, %c0_i32_0, %c0_i32_1 : i32, i32, i32, i32
  }
}

</mosaic_0001>

<bundles_post_ra>
// kernel: group.1
= control target key start
LH: loop header
LB: loop body
LE: loop exit
PB: predicated region body
PF: predicated region fallthrough
CT: control target
= control target key end

     0   :  { %7 = vsyncpa [#allocation4], 0  ;;  %s532_s9 = smov 0   ;;  %s607_s0 = inlined_call_operand.vmem [shape: f32[2,3,64], index: 0, kind: input, shape index: {}]   ;;  %s608_s1 = inlined_call_operand.vmem [shape: f32[384], index: 1, kind: input, shape index: {}]   ;;  %s609_s2 = inlined_call_operand.vmem [shape: f32[2,8,3,8], index: 2, kind: output, shape index: {}]  }
   0x1 LB: > { %s383_s10 = sadd.s32 4294967295, %s497_s9   ;;  %p385_p0 = scmp.ge.s32.totalorder %s497_s9, 1  ;;  %s497_s9 = sphi %s532_s9, %s13_s9  }
   0x2   : > { %p91_p1 = scmp.lt.s32.totalorder %s497_s9, 3  ;;  %s103_s13 = sshll.u32 %s608_s1, 4  ;;  %s104_s13 = int_to_ptr.vmem [resolvable:$true] %s103_s13 }
   0x3   : > { %p412_p3 = scmp.eq.s32.totalorder %s383_s10, 0  ;;  %s515_s14 = smov [#allocation3]  }
   0x4   : > { %p92_p2 = pnand %p385_p0, %p91_p1 }
   0x6   : > { %p408_p4 = pneg %p92_p2  ;;  %123 = sbr.rel (%p92_p2) target bundleno = 1023 (0x3ff), region = 28 }
   0x8   : > { %p409_p5 = pnand %p412_p3, %p408_p4 }
   0xa   : > { %411 = dma.vmem_to_smem (!%p409_p5), %s104_s13, 48, %s515_s14, [#allocation4]  }
   0xb   : > { %492 = dma.done.wait (%p412_p3), [#allocation4], 48  }
   0xc   : > { %494 = vsyncadd (%p412_p3), [#allocation4], 4294967248 }
   0xd   : > { %130 = sfence }
   0xe   : > { %p146_p6 = scmp.lt.s32.totalorder %s383_s10, 1  ;;  %s543_s15 = smul.u32 192, %s383_s10  ;;  %v157_v0 = vlaneseq  ;;  %v559_v3 = vmov inf  }
   0xf   : > { %s557_s24 = smov 0   ;;  %s561_s25 = smov 0  }
  0x10   : > { %s611_s10 = smov (!%p146_p6, %s383_s10), 1  ;;  %v545_v1 = vand.u32 127, %v157_v0 }
  0x11   : > { %s390_s16 = sshll.u32 %s611_s10, 2  ;;  %s399_s17 = sshll.u32 %s611_s10, 5 }
  0x12   : > { %s149_s20 = scalar_lea.vmem %s607_s0, %s390_s16  ;;  %s553_s23 = scalar_lea.vmem %s609_s2, %s399_s17 }
  0x13   : > { %v555_v2 = vld [vmem:[%s149_s20] sm:$0x7] }
  0x14 LB: >> { %s167_s26 = sadd.s32 %s501_s24, %s543_s15  ;;  %s169_s27 = sadd.s32 64, %s543_s15  ;;  %vm193_vm0 = vcmask 516096   ;;  %s509_s25 = sphi %s561_s25, %s164_s25   ;;  %v505_v3 = vphi %v559_v3, %v195_v3   ;;  %s501_s24 = sphi %s557_s24, %s403_s24  }
  0x15   : >> { %s168_s28 = sld [smem:[#allocation3 + %s167_s26]]  ;;  %s170_s29 = sadd.s32 %s501_s24, %s169_s27 }
  0x16   : >> { %s171_s30 = sld [smem:[#allocation3 + %s170_s29]]  ;;  %s172_s3 = sadd.s32 128, %s543_s15 }
  0x17   : >> { %s173_s4 = sadd.s32 %s501_s24, %s172_s3  ;;  %s192_s6 = scalar_lea.vmem [#allocation2], %s509_s25 }
  0x18   : >> { %s174_s5 = sld [smem:[#allocation3 + %s173_s4]]  ;;  %s164_s25 = sadd.s32 1, %s509_s25  }
  0x19   : >> { %p161_p7 = scmp.ge.s32.totalorder %s164_s25, 8  }
  0x1a   : > { %s586_s8 = smov (%p161_p7), 0  }
  0x1b   : >> { %v175_v4 = vstv %s168_s28 }
  0x1c   : >> { %v176_v5 = vsub.f32 %v555_v2, %v175_v4  ;;  %v178_v6 = vstv %s171_s30 }
  0x1d   : >> { %v179_v7 = vsub.f32 %v555_v2, %v178_v6 }
  0x1e   : >> { %v185_v8 = vstv %s174_s5  ;;  %v177_v9 = vmul.f32 %v176_v5, %v176_v5 }
  0x1f   : >> { %v180_v10 = vmul.f32 %v179_v7, %v179_v7  ;;  %v186_v11 = vsub.f32 %v555_v2, %v185_v8 }
  0x21   : >> { %v182_v12 = vrot.slane %v180_v10, 1  ;;  %v187_v13 = vmul.f32 %v186_v11, %v186_v11 }
  0x23   : >> { %v184_v14 = vadd.f32 %v182_v12, %v177_v9  ;;  %v189_v15 = vrot.slane %v187_v13, 2 }
  0x25   : >> { %v191_v16 = vadd.f32 %v189_v15, %v184_v14 }
  0x27   : >> { %v195_v3 = vmin.f32 %v505_v3, %v191_v16   ;;  %194 = vst.msk [vmem:[%s192_s6] sm:$0x1] %vm193_vm0, %v191_v16 }
  0x29   : >> { %v196_v17 = vsel %vm193_vm0, %v195_v3, -inf }
  0x2a   : >> { %197 = vmax.xlane.f32.xlu0 %v196_v17 }
  0x9d   : >> { %v198_v18 = vpop.xlane.xlu0 %197 }
  0x9e   : >> { %v199_v19 = vrot.slane %v198_v18, 4 }
  0xa0   : >> { %v200_v20 = vmax.f32 %v198_v18, %v199_v19 }
  0xa2   : >> { %v201_v21 = vrot.slane %v200_v20, 2 }
  0xa4   : >> { %v202_v22 = vmax.f32 %v200_v20, %v201_v21 }
  0xa6   : >> { %v203_v23 = vrot.slane %v202_v22, 1 }
  0xa8   : >> { %v204_v24 = vmax.f32 %v202_v22, %v203_v23 }
  0xaa   : >> { %400 = vpush %v204_v24 }
  0xdb   : >> { %s401_s7 = spop %400 }
  0xdc   : >> { %v206_v25 = vstv %s401_s7 }
  0xdd   : >> { %vm207_vm1 = vcmp.eq.f32.partialorder %v195_v3, %v206_v25 }
  0xde   : >> { %v208_v26 = vsel %vm207_vm1, %v545_v1, 64 }
  0xdf   : >> { %v209_v27 = vsel %vm193_vm0, %v208_v26, 2147483647 }
  0xe0   : >> { %v211_v28 = vshra.s32 %v209_v27, 16  ;;  %v210_v30 = vand.u32 65535, %v209_v27 }
  0xe2   : >> { %v213_v29 = vcvt.s32.f32 %v211_v28  ;;  %v212_v32 = vcvt.s32.f32 %v210_v30 }
  0xe4   : >> { %214 = vmin.xlane.f32.xlu0 %v213_v29 }
 0x157   : >> { %v215_v31 = vpop.xlane.xlu0 %214 }
 0x158   : >> { %vm216_vm2 = vcmp.eq.f32.partialorder %v213_v29, %v215_v31  ;;  %v221_v34 = vcvt.f32.s32 %v215_v31 }
 0x159   : >> { %v217_v33 = vsel %vm216_vm2, %v212_v32, inf }
 0x15a   : >> { %218 = vmin.xlane.f32.xlu1 %v217_v33  ;;  %v222_v36 = vshll.u32 %v221_v34, 16 }
 0x1cd   : >> { %v219_v35 = vpop.xlane.xlu1 %218 }
 0x1ce   : >> { %v220_v37 = vcvt.f32.s32 %v219_v35 }
 0x1d0   : >> { %v223_v38 = vadd.s32 %v222_v36, %v220_v37 }
 0x1d2   : >> { %v224_v39 = vrot.slane %v223_v38, 4 }
 0x1d4   : >> { %vm225_vm3 = vcmp.lt.s32.totalorder %v223_v38, %v224_v39 }
 0x1d5   : >> { %v226_v40 = vsel %vm225_vm3, %v223_v38, %v224_v39 }
 0x1d6   : >> { %v227_v41 = vrot.slane %v226_v40, 2 }
 0x1d8   : >> { %vm228_vm4 = vcmp.lt.s32.totalorder %v226_v40, %v227_v41 }
 0x1d9   : >> { %v229_v42 = vsel %vm228_vm4, %v226_v40, %v227_v41 }
 0x1da   : >> { %v230_v43 = vrot.slane %v229_v42, 1 }
 0x1dc   : >> { %vm231_vm5 = vcmp.lt.s32.totalorder %v229_v42, %v230_v43 }
 0x1dd   : >> { %v232_v44 = vsel %vm231_vm5, %v229_v42, %v230_v43 }
 0x1de   : >> { %402 = vpush %v232_v44 }
 0x20b   : > { %163 = sbr.rel (!%p161_p7) target bundleno = 20 (0x14), region = 79 }
 0x20f   : >> { %s403_s24 = spop %402  }
 0x210 LB: >> { %v240_v45 = vld [vmem:[#allocation2] sm:$0xff]  ;;  %vm241_vm6 = vcmask 523264   ;;  %v516_v61 = vmov 0.0   ;;  %s396_s10 = sshll.u32 %s513_s8, 2  ;;  %vm293_vm10 = vcmask 59392   ;;  %s239_s8 = sadd.s32 1, %s513_s8   ;;  %s513_s8 = sphi %s586_s8, %s239_s8  }
 0x211   : >> { %v242_v46 = vsel %vm241_vm6, %v240_v45, inf  ;;  %s292_s11 = scalar_lea.vmem %s553_s23, %s396_s10  ;;  %p236_p8 = scmp.ge.s32.totalorder %s239_s8, 8  }
 0x212   : >> { %243 = vmin.xlane.f32.xlu0 %v242_v46 }
 0x285   : >> { %v244_v47 = vpop.xlane.xlu0 %243 }
 0x286   : >> { %vm245_vm7 = vcmp.eq.f32.partialorder %v240_v45, %v244_v47 }
 0x287   : >> { %v246_v48 = vsel %vm245_vm7, %v545_v1, 64 }
 0x288   : >> { %v247_v49 = vsel %vm241_vm6, %v246_v48, 2147483647 }
 0x289   : >> { %v249_v50 = vshra.s32 %v247_v49, 16  ;;  %v248_v52 = vand.u32 65535, %v247_v49 }
 0x28b   : >> { %v251_v51 = vcvt.s32.f32 %v249_v50  ;;  %v250_v54 = vcvt.s32.f32 %v248_v52 }
 0x28d   : >> { %252 = vmin.xlane.f32.xlu0 %v251_v51 }
 0x300   : >> { %v253_v53 = vpop.xlane.xlu0 %252 }
 0x301   : >> { %vm254_vm8 = vcmp.eq.f32.partialorder %v251_v51, %v253_v53  ;;  %v259_v56 = vcvt.f32.s32 %v253_v53 }
 0x302   : >> { %v255_v55 = vsel %vm254_vm8, %v250_v54, inf }
 0x303   : >> { %256 = vmin.xlane.f32.xlu1 %v255_v55  ;;  %v260_v58 = vshll.u32 %v259_v56, 16 }
 0x376   : >> { %v257_v57 = vpop.xlane.xlu1 %256 }
 0x377   : >> { %v258_v59 = vcvt.f32.s32 %v257_v57 }
 0x379   : >> { %v261_v60 = vadd.s32 %v260_v58, %v258_v59 }
 0x37b   : >> { %vm262_vm9 = vcmp.eq.s32.totalorder %v545_v1, %v261_v60 }
 0x37c   : >> { %v393_v62 = vsel %vm262_vm9, 1.0, %v516_v61  ;;  %v295_v63 = vsel %vm262_vm9, inf, %v240_v45 }
 0x37d   : >> { %394 = vmatpush.xpose.msk.msra.mxu0 %vm241_vm6, %v393_v62  ;;  %296 = vst.msk [vmem:[#allocation2] sm:$0xff] %vm241_vm6, %v295_v63 }
 0x380   : >> { %395 = vmatmul.msk.f32.vlgmr.msra.gmra.mxu0 %vm241_vm6, %v555_v2 }
 0x3fa   : > { %238 = sbr.rel (!%p236_p8) target bundleno = 528 (0x210), region = 90 }
 0x3fd   : >> { %v288_v0 = vpop.f32.mrf.mxu0 }
 0x3fe   : >> { %294 = vst.msk [vmem:[%s292_s11] sm:$0x7] %vm293_vm10, %v288_v0 }
 0x3ff PF: > { %s13_s9 = sadd.s32 1, %s497_s9  }
 0x400   : > { %p10_p9 = scmp.ge.s32.totalorder %s13_s9, 4  }
 0x402   :  { %12 = sbr.rel (!%p10_p9) target bundleno = 1 (0x1), region = 101 }
 0x407   :  { %318 = vsyncpa [#allocation4], 1 }
 0x408   :  { %320 = vsyncpa [#allocation4 + $0x1], 1 }

</bundles_post_ra>
